<compile_context>
chip_gen: v7x
topology: tpu7x:2x2x1
jax: 0.10.0
libtpu: 0.0.40
codegen_flags: <defaults>
</compile_context>

<pallas_src>
import functools

import jax
import jax.numpy as jnp
import numpy as np
from jax.experimental import pallas as pl
from jax.experimental.pallas import tpu as pltpu


def _round_up(x, m):
    return ((x + m - 1) // m) * m


# --------------------------------------------------------------------------
# Path 1: small vocab -> table resident in VMEM, one-hot MXU gather.
# --------------------------------------------------------------------------
def _embed_onehot_kernel(tok_ref, emb_ref, out_ref):
    """tok_ref: (rows, 1) int32, emb_ref: (V, H) full table, out_ref: (rows, H)."""
    ids = tok_ref[...]                                        # (rows, 1)
    rows = ids.shape[0]
    V = emb_ref.shape[0]
    vocab_iota = jax.lax.broadcasted_iota(jnp.int32, (rows, V), 1)
    onehot = (vocab_iota == ids).astype(emb_ref.dtype)        # (rows, V)
    out_ref[...] = jnp.dot(
        onehot, emb_ref[...], preferred_element_type=jnp.float32
    ).astype(out_ref.dtype)


def _token_embedding_onehot(tok_flat, emb_table, rows_per_step):
    Np = tok_flat.shape[0]
    V, H = emb_table.shape
    itemsize = jnp.dtype(emb_table.dtype).itemsize
    tok2d = tok_flat.reshape(Np, 1)
    grid = (Np // rows_per_step,)

    out = pl.pallas_call(
        _embed_onehot_kernel,
        out_shape=jax.ShapeDtypeStruct((Np, H), emb_table.dtype),
        grid_spec=pltpu.PrefetchScalarGridSpec(
            num_scalar_prefetch=0,
            grid=grid,
            in_specs=[
                pl.BlockSpec((rows_per_step, 1), lambda i: (i, 0)),   # ids
                pl.BlockSpec((V, H), lambda i: (0, 0)),               # table, resident
            ],
            out_specs=pl.BlockSpec((rows_per_step, H), lambda i: (i, 0)),
        ),
        compiler_params=pltpu.CompilerParams(
            dimension_semantics=("parallel",),
        ),
        cost_estimate=pl.CostEstimate(
            flops=2 * Np * V * H,
            transcendentals=0,
            bytes_accessed=int(V * H * itemsize + Np * H * itemsize + Np * 4),
        ),
    )(tok2d, emb_table)
    return out


# --------------------------------------------------------------------------
# Path 2: large vocab -> table in HBM, scalar-prefetched per-row DMA gather.
# --------------------------------------------------------------------------
def _embed_gather_kernel(tok_ref, emb_hbm, out_ref, sems, *, rows_per_step):
    """tok_ref: SMEM flat ids (scalar prefetch), emb_hbm: (V, H) table in HBM,
    out_ref: (rows_per_step, H) VMEM output block, sems: (rows_per_step,) DMA sems.
    """
    base = pl.program_id(0) * rows_per_step

    # Scalar (SMEM) reads of this block's ids, all before any DMA wait so the
    # scalar path isn't stalled by semaphore waits.
    toks = [tok_ref[base + r] for r in range(rows_per_step)]

    copies = [
        pltpu.make_async_copy(
            emb_hbm.at[pl.ds(toks[r], 1), :],    # one table row in HBM
            out_ref.at[pl.ds(r, 1), :],          # straight into the output block
            sems.at[r],
        )
        for r in range(rows_per_step)
    ]
    # Issue all row gathers, then wait -- DMA latencies overlap within a step.
    for c in copies:
        c.start()
    for c in copies:
        c.wait()


def _token_embedding_gather(tok_flat, emb_table, rows_per_step):
    Np = tok_flat.shape[0]
    V, H = emb_table.shape
    itemsize = jnp.dtype(emb_table.dtype).itemsize
    grid = (Np // rows_per_step,)

    kernel = functools.partial(_embed_gather_kernel, rows_per_step=rows_per_step)
    out = pl.pallas_call(
        kernel,
        out_shape=jax.ShapeDtypeStruct((Np, H), emb_table.dtype),
        grid_spec=pltpu.PrefetchScalarGridSpec(
            num_scalar_prefetch=1,                       # token ids -> SMEM
            grid=grid,
            in_specs=[
                pl.BlockSpec(memory_space=pl.ANY),       # table stays in HBM
            ],
            out_specs=pl.BlockSpec((rows_per_step, H), lambda i, tok: (i, 0)),
            scratch_shapes=[
                pltpu.SemaphoreType.DMA((rows_per_step,)),
            ],
        ),
        compiler_params=pltpu.CompilerParams(
            dimension_semantics=("parallel",),           # megacore-shardable
        ),
        cost_estimate=pl.CostEstimate(
            flops=0,
            transcendentals=0,
            bytes_accessed=int(2 * Np * H * itemsize + Np * 4),
        ),
    )(tok_flat, emb_table)
    return out


# --------------------------------------------------------------------------
# Public wrapper (nn.Embedding(vocab, hidden, padding_idx=0) forward).
# --------------------------------------------------------------------------
def token_embedding(tokens, emb_table, *, impl="auto"):
    """out[b, s, :] = emb_table[tokens[b, s], :]."""
    B, S = tokens.shape
    V, H = emb_table.shape
    N = B * S
    itemsize = jnp.dtype(emb_table.dtype).itemsize

    if impl == "auto":
        # One-hot/MXU path only when the table is small enough to sit in VMEM
        # and the (rows, V) one-hot tile stays tiny.
        small = (V <= 2048) and (V * H * itemsize <= 8 * 1024 * 1024)
        impl = "onehot" if small else "gather"

    rows_per_step = min(256 if impl == "onehot" else 64, _round_up(N, 8))

    # Flatten ids, clamp (OOB HBM reads are unchecked on TPU), pad to a
    # multiple of rows_per_step with padding_idx (row 0).
    tok_flat = jnp.clip(tokens.reshape(N).astype(jnp.int32), 0, V - 1)
    n_pad = (-N) % rows_per_step
    if n_pad:
        tok_flat = jnp.concatenate(
            [tok_flat, jnp.zeros((n_pad,), dtype=jnp.int32)])

    if impl == "onehot":
        out_flat = _token_embedding_onehot(tok_flat, emb_table, rows_per_step)
    else:
        out_flat = _token_embedding_gather(tok_flat, emb_table, rows_per_step)

    return out_flat[:N].reshape(B, S, H)


if __name__ == "__main__":
    # Module config: vocab_size = num_items + 2, hidden = hidden_units
    num_items = 30
    hidden = 32
    vocab_size = num_items + 2   # 32
    B, S = 2, 8

    key = jax.random.PRNGKey(0)
    k_emb, k_tok = jax.random.split(key)

    # nn.Embedding default init ~ N(0, 1); padding_idx row zeroed.
    emb_table = jax.random.normal(k_emb, (vocab_size, hidden), dtype=jnp.float32)
    emb_table = emb_table.at[0].set(0.0)

    # Tokens include some padding (0) entries.
    tokens = jax.random.randint(k_tok, (B, S), 0, vocab_size, dtype=jnp.int32)
    tokens = tokens.at[0, 0].set(0)  # force a padding token

    ref = np.asarray(emb_table)[np.asarray(tokens)]

    # Default dispatch (small vocab -> one-hot MXU path).
    out = jax.block_until_ready(token_embedding(tokens, emb_table))
    assert out.shape == (B, S, hidden)
    assert np.allclose(np.asarray(out), ref, atol=1e-6)
    assert np.allclose(np.asarray(out)[0, 0], 0.0)  # padding_idx row is zero

    # Also exercise the large-vocab DMA-gather path to keep it validated.
    out_g = jax.block_until_ready(token_embedding(tokens, emb_table, impl="gather"))
    assert np.allclose(np.asarray(out_g), ref, atol=1e-6)

    print("KERNEL_OK")
</pallas_src>

<mosaic_0001>
module attributes {stable_mosaic.version = 11 : i64} {
  func.func @_embed_onehot_kernel(%arg0: i32, %arg1: memref<16x1xi32, #tpu.memory_space<vmem>>, %arg2: memref<32x32xf32, #tpu.memory_space<vmem>>, %arg3: memref<16x32xf32, #tpu.memory_space<vmem>>) attributes {dimension_semantics = [#tpu.dimension_semantics<parallel>], iteration_bounds = array<i64: 1>, scalar_prefetch = 0 : i64, scratch_operands = 0 : i64, tpu.core_type = #tpu.core_type<tc>, window_params = [{transform_indices = @transform_0, window_bounds = array<i64: 16, 1>}, {pipeline_mode = #tpu.pipeline_mode<synchronous>, transform_indices = @transform_1, window_bounds = array<i64: 32, 32>}, {transform_indices = @transform_2, window_bounds = array<i64: 16, 32>}]} {
    %c0 = arith.constant 0 : index
    %c0_0 = arith.constant 0 : index
    %0 = vector.load %arg1[%c0, %c0_0] : memref<16x1xi32, #tpu.memory_space<vmem>>, vector<16x1xi32>
    %1 = tpu.iota {dimensions = array<i32: 1>} : vector<16x32xi32>
    %2 = vector.broadcast %0 : vector<16x1xi32> to vector<16x32xi32>
    %3 = arith.cmpi eq, %1, %2 : vector<16x32xi32>
    %4 = arith.extui %3 : vector<16x32xi1> to vector<16x32xi32>
    %5 = arith.sitofp %4 : vector<16x32xi32> to vector<16x32xf32>
    %c0_1 = arith.constant 0 : index
    %c0_2 = arith.constant 0 : index
    %6 = vector.load %arg2[%c0_1, %c0_2] : memref<32x32xf32, #tpu.memory_space<vmem>>, vector<32x32xf32>
    %cst = arith.constant dense<0.000000e+00> : vector<16x32xf32>
    %7 = tpu.matmul %5, %6, %cst {dimension_numbers = #tpu.dot_dimension_numbers<[1], [0], [0], [1], [0, 0, 1, 1], [], []>} : vector<16x32xf32>, vector<32x32xf32>, vector<16x32xf32> -> vector<16x32xf32>
    %c0_3 = arith.constant 0 : index
    %c0_4 = arith.constant 0 : index
    %8 = vector.load %arg3[%c0_3, %c0_4] : memref<16x32xf32, #tpu.memory_space<vmem>>, vector<16x32xf32>
    tpu.vector_store %arg3[%c0_3, %c0_4], %7 {strides = array<i32>} : memref<16x32xf32, #tpu.memory_space<vmem>>, vector<16x32xf32>,
    return
  }
  func.func @transform_0(%arg0: i32) -> (i32, i32) {
    %c0_i32 = arith.constant 0 : i32
    %c0_i32_0 = arith.constant 0 : i32
    return %arg0, %c0_i32 : i32, i32
  }
  func.func @transform_1(%arg0: i32) -> (i32, i32) {
    %c0_i32 = arith.constant 0 : i32
    %c0_i32_0 = arith.constant 0 : i32
    %c0_i32_1 = arith.constant 0 : i32
    return %c0_i32, %c0_i32_0 : i32, i32
  }
  func.func @transform_2(%arg0: i32) -> (i32, i32) {
    %c0_i32 = arith.constant 0 : i32
    %c0_i32_0 = arith.constant 0 : i32
    return %arg0, %c0_i32 : i32, i32
  }
}

</mosaic_0001>

<bundles_post_ra>
// kernel: tpu_custom_call.1
= control target key start
LH: loop header
LB: loop body
LE: loop exit
PB: predicated region body
PF: predicated region fallthrough
CT: control target
= control target key end

     0   :  { %7 = vsyncpa [#allocation3], 0  ;;  %s288_s0 = inlined_call_operand.vmem [shape: s32[16,1], index: 0, kind: input, shape index: {}]   ;;  %s289_s1 = inlined_call_operand.hbm [shape: f32[32,32], index: 1, kind: input, shape index: {}]   ;;  %s290_s2 = inlined_call_operand.hbm [shape: f32[16,32], index: 2, kind: output, shape index: {}]  }
   0x1   :  { %8 = vsyncpa [#allocation4], 0  ;;  %s231_s9 = smov [#allocation2]   ;;  %s183_s13 = scalar_lea.hbm %s289_s1, 512 }
   0x2   :  { %s16_s10 = sshll.u32 %s231_s9, 4  ;;  %p184_p0 = scmp.ne.s32.totalorder %s289_s1, %s183_s13  ;;  %s17_s10 = int_to_ptr.vmem [resolvable:$true] %s16_s10 }
   0x3   :  { %p187_p1 = scmp.lt.u32.totalorder %s183_s13, %s289_s1 }
   0x5   :  { %p189_p2 = pnand %p187_p1, %p184_p0 }
   0x7   :  { %192 = shalt.err (!%p189_p2)
}
   0x8   :  { %s193_s18 = scalar_lea.vmem %s17_s10, 512  ;;  %p198_p4 = scmp.lt.s32.totalorder %s17_s10, %s17_s10 }
   0x9   :  { %p194_p3 = scmp.ne.s32.totalorder %s17_s10, %s193_s18  ;;  %p199_p5 = scmp.lt.s32.totalorder %s193_s18, %s193_s18 }
   0xb   :  { %p200_p6 = por %p199_p5, %p198_p4 }
   0xd   :  { %p201_p7 = pnand %p200_p6, %p194_p3 }
   0xf   :  { %204 = shalt.err (!%p201_p7)
}
  0x10   :  { %s232_s19 = smov 128   ;;  %s233_s20 = smov 8  }
  0x11   :  { %22 = dma.hbm_to_vmem [thread:$0]  %s289_s1, 512, %s17_s10, [#allocation3], %s232_s19, %s232_s19, %s233_s20  }
  0x12   :  { %227 = dma.done.wait [#allocation3], 512  }
  0x13   :  { %228 = vsyncadd [#allocation3], 4294966784  ;;  %v234_v0 = vmov 0   ;;  %v26_v1 = vld [vmem:[%s288_s0] sm:$0xff]  ;;  %v43_v3 = vld [vmem:[#allocation2 + $0x8] sm:$0xff]  ;;  %v28_v9 = vlaneseq  ;;  %vm46_vm0 = vcmask 261120  }
  0x14   :  { %182 = vset.pattern.permute.xlu0 %v234_v0  ;;  %v42_v2 = vld [vmem:[#allocation2] sm:$0xff]  ;;  %v44_v4 = vld [vmem:[#allocation2 + $0x10] sm:$0xff]  ;;  %v45_v5 = vld [vmem:[#allocation2 + $0x18] sm:$0xff]  ;;  %v235_v12 = vmov 0.0  }
  0x15   :  { %31 = vperm.xlu0 %182, %v26_v1   ;;  %v27_v6 = vld [vmem:[%s288_s0 + $0x8] sm:$0xff]  ;;  %v168_v7 = vpack.c.bf16 %v43_v3, %v42_v2  ;;  %v172_v8 = vpack.c.bf16 %v45_v5, %v44_v4  ;;  %v29_v10 = vand.u32 127, %v28_v9  ;;  %s236_s0 = smov [#allocation5]  }
  0x16   :  { %s135_s1 = sshll.u32 %s236_s0, 4  ;;  %s136_s1 = int_to_ptr.vmem [resolvable:$true] %s135_s1 }
  0x17   :  { %169 = vmatprep.subr.bf16.mxu0 %v168_v7  ;;  %s205_s27 = scalar_lea.vmem %s136_s1, 256  ;;  %p210_p9 = scmp.lt.s32.totalorder %s136_s1, %s136_s1 }
  0x18   :  { %171 = vmatpush3.bf16.msra.mxu0 %v168_v7  ;;  %p206_p8 = scmp.ne.s32.totalorder %s136_s1, %s205_s27  ;;  %p211_p10 = scmp.lt.s32.totalorder %s205_s27, %s205_s27 }
  0x19   :  { %34 = vperm.xlu0 %182, %v27_v6   ;;  %173 = vmatprep.subr.bf16.mxu0 %v172_v8 }
  0x1a   :  { %p212_p11 = por %p211_p10, %p210_p9 }
  0x1c   :  { %175 = vmatpush3.bf16.msra.mxu0 %v172_v8  ;;  %p213_p12 = pnand %p212_p11, %p206_p8 }
  0x94   :  { %v32_v11 = vpop.permute.xlu0 %31 }
  0x95   :  { %vm36_vm1 = vcmp.eq.s32.totalorder %v29_v10, %v32_v11 }
  0x96   :  { %v147_v13 = vsel %vm36_vm1, 1.0, %v235_v12 }
  0x97   :  { %165 = vmatprep.mubr.msk.f32.mxu0 %vm46_vm0, %v147_v13 }
  0x98   :  { %v35_v14 = vpop.permute.xlu0 %34 }
  0x99   :  { %vm37_vm2 = vcmp.eq.s32.totalorder %v29_v10, %v35_v14 }
  0x9a   :  { %v148_v15 = vsel %vm37_vm2, 1.0, %v235_v12 }
  0x9b   :  { %166 = vmatmul.mubr.msk.f32.vlgmr.msra.gmra.mrb[0].mxu0 %vm46_vm0, %v148_v15 }
 0x16e   :  { %v167_v16 = vpop.f32.mrb[0].mxu0 }
 0x16f   :  { %129 = vst.msk [vmem:[#allocation5 + $0x8] sm:$0xff] %vm46_vm0, %v167_v16  ;;  %v119_v17 = vpop.f32.mrb[1].mxu0 }
 0x170   :  { %128 = vst.msk [vmem:[#allocation5] sm:$0xff] %vm46_vm0, %v119_v17 }
 0x171   :  { %216 = shalt.err (!%p213_p12)
}
 0x172   :  { %s217_s30 = scalar_lea.hbm %s290_s2, 256 }
 0x173   :  { %p218_p13 = scmp.ne.s32.totalorder %s290_s2, %s217_s30  ;;  %p221_p0 = scmp.lt.u32.totalorder %s217_s30, %s290_s2 }
 0x175   :  { %p223_p1 = pnand %p221_p0, %p218_p13 }
 0x177   :  { %226 = shalt.err (!%p223_p1)
}
 0x178   :  { %141 = dma.vmem_to_hbm [thread:$0]  %s136_s1, 256, %s290_s2, [#allocation4], %s232_s19, %s232_s19, %s233_s20  }
 0x179   :  { %229 = dma.done.wait [#allocation4], 256  }
 0x17a   :  { %230 = vsyncadd [#allocation4], 4294967040 }
 0x17b   :  { %145 = vsyncpa [#allocation3], 1 }
 0x17c   :  { %146 = vsyncpa [#allocation4], 1 }

</bundles_post_ra>
